<compile_context>
chip_gen: v6e
topology: v6e:2x2x1
jax: 0.10.0
libtpu: 0.0.40
codegen_flags: <defaults>
</compile_context>

<pallas_src>
import jax
import jax.numpy as jnp
import numpy as np
from jax.experimental import pallas as pl
from jax.experimental.pallas import tpu as pltpu


def _rowwise_entropy_sum(x):
    """Plain-JAX entropy sum over rows (used only for the tiny tail remainder)."""
    x = x.astype(jnp.float32)
    m = jnp.max(x, axis=-1, keepdims=True)
    xm = x - m
    e = jnp.exp(xm)
    s = jnp.sum(e, axis=-1, keepdims=True)
    ent = jnp.log(s)[..., 0] - jnp.sum(e * xm, axis=-1) / s[..., 0]
    return jnp.sum(ent)


def entropy_regularization_loss(logits, target=None, *,
                                target_block_bytes=4 * 1024 * 1024,
                                max_tile_rows=4096):
    """1 - mean_entropy / log(vocab_size).  `target` is unused (torch parity)."""
    del target  # unused by the forward pass
    vocab = logits.shape[-1]
    x = logits.reshape(-1, vocab)                      # (rows, vocab)
    rows = x.shape[0]
    itemsize = jnp.dtype(x.dtype).itemsize
    sub = {4: 8, 2: 16, 1: 32}.get(itemsize, 8)        # sublane packing multiple
    bytes_per_row = vocab * itemsize

    # --- choose a tile that is ~4 MiB of input (capped for small-vocab cases
    #     so (tile_rows, 1) per-row temporaries stay cheap in VMEM). ---------
    if rows * bytes_per_row <= target_block_bytes and rows <= max_tile_rows:
        tile_rows = rows                               # single full-array block
    else:
        tile_rows = max(sub,
                        (min(max_tile_rows, target_block_bytes // bytes_per_row)
                         // sub) * sub)
        tile_rows = min(tile_rows, rows)               # extreme huge-vocab edge

    total_tiles = rows // tile_rows                    # full tiles only (>= 1)
    tail = rows - total_tiles * tile_rows              # leftover rows (< tile_rows)

    n_chunks = 2 if total_tiles >= 2 else 1            # megacore split for v7x
    tpc = -(-total_tiles // n_chunks)                  # tiles per chunk
    needs_tile_guard = (n_chunks * tpc != total_tiles) # odd tile count -> 1 dup step

    # Input block index, clamped so over-provisioned steps re-read a valid
    # (full, in-bounds) tile; their contribution is skipped with pl.when below.
    if needs_tile_guard:
        in_index = lambda c, t: (jnp.minimum(c * tpc + t, total_tiles - 1), 0)
    else:
        in_index = lambda c, t: (c * tpc + t, 0)

    def kernel(x_ref, out_ref):
        c = pl.program_id(0)
        t = pl.program_id(1)

        @pl.when(t == 0)
        def _():
            out_ref[...] = jnp.zeros_like(out_ref)

        def compute_and_accumulate():
            xv = x_ref[...].astype(jnp.float32)                    # (tile_rows, vocab)
            m = jnp.max(xv, axis=-1, keepdims=True)
            xm = xv - m
            e = jnp.exp(xm)                                        # only transcendental left
            s = jnp.sum(e, axis=-1, keepdims=True)                 # (tile_rows, 1)
            # entropy(row) = -sum(p*log p) = log(s) - sum(e*xm)/s
            # (per-row divide only; exact reciprocal to preserve 1e-5 tolerance)
            ent = jnp.log(s) - (jnp.sum(e * xm, axis=-1, keepdims=True)
                                * pl.reciprocal(s, approx=False))
            out_ref[...] += ent[None]                              # (1, tile_rows, 1) VPU add

        if needs_tile_guard:
            @pl.when(c * tpc + t < total_tiles)
            def _():
                compute_and_accumulate()
        else:
            compute_and_accumulate()

    partials = pl.pallas_call(
        kernel,
        out_shape=jax.ShapeDtypeStruct((n_chunks, tile_rows, 1), jnp.float32),
        grid_spec=pltpu.PrefetchScalarGridSpec(
            num_scalar_prefetch=0,
            grid=(n_chunks, tpc),
            in_specs=[pl.BlockSpec((tile_rows, vocab), in_index)],
            out_specs=pl.BlockSpec((1, tile_rows, 1), lambda c, t: (c, 0, 0)),
        ),
        compiler_params=pltpu.CompilerParams(
            dimension_semantics=("parallel", "arbitrary"),
            vmem_limit_bytes=48 * 1024 * 1024,
        ),
    )(x)

    ent_sum = jnp.sum(partials)
    if tail:
        # Remainder rows (< tile_rows) are negligible; reduce them in plain JAX
        # instead of an HBM-copying pad/concatenate pass.
        ent_sum = ent_sum + _rowwise_entropy_sum(x[total_tiles * tile_rows:])

    mean_entropy = ent_sum / jnp.float32(rows)
    return 1.0 - mean_entropy / jnp.float32(np.log(vocab))


def _reference(logits):
    """Literal port of the torch forward (with the +1e-9 epsilon)."""
    x = logits.astype(jnp.float32)
    p = jax.nn.softmax(x, axis=-1)
    ent = -jnp.sum(p * jnp.log(p + 1e-9), axis=-1).mean()
    return 1.0 - ent / np.log(logits.shape[-1])


if __name__ == "__main__":
    key = jax.random.PRNGKey(0)

    # --- Test 1: shapes implied by the module (batch=2, seq=8, vocab=32). ---
    batch, seq, vocab = 2, 8, 32
    k1, k2, k3 = jax.random.split(key, 3)
    logits = jax.random.normal(k1, (batch, seq, vocab), dtype=jnp.float32)
    target = jax.random.randint(k2, (batch, seq), 0, vocab)   # unused by forward

    loss = jax.block_until_ready(entropy_regularization_loss(logits, target))
    ref = _reference(logits)
    assert np.allclose(np.asarray(loss), np.asarray(ref), rtol=1e-5, atol=1e-5), (loss, ref)

    # --- Test 2: force multi-tile / multi-chunk / tail paths with a tiny
    #     block budget (rows=26 -> 3 full 8-row tiles across 2 chunks + 2-row tail).
    logits2 = jax.random.normal(k3, (2, 13, vocab), dtype=jnp.float32)
    loss2 = jax.block_until_ready(
        entropy_regularization_loss(logits2, None, target_block_bytes=1024))
    ref2 = _reference(logits2)
    assert np.allclose(np.asarray(loss2), np.asarray(ref2), rtol=1e-5, atol=1e-5), (loss2, ref2)

    print("KERNEL_OK")
</pallas_src>

<mosaic_0001>
module attributes {stable_mosaic.version = 11 : i64} {
  func.func @kernel(%arg0: i32, %arg1: i32, %arg2: memref<16x32xf32, #tpu.memory_space<vmem>>, %arg3: memref<1x16x1xf32, #tpu.memory_space<vmem>>) attributes {dimension_semantics = [#tpu.dimension_semantics<parallel>, #tpu.dimension_semantics<arbitrary>], iteration_bounds = array<i64: 1, 1>, scalar_prefetch = 0 : i64, scratch_operands = 0 : i64, tpu.core_type = #tpu.core_type<tc>, window_params = [{transform_indices = @transform_0, window_bounds = array<i64: 16, 32>}, {transform_indices = @transform_1, window_bounds = array<i64: 1, 16, 1>}]} {
    %c0_i32 = arith.constant 0 : i32
    %0 = arith.cmpi eq, %arg1, %c0_i32 : i32
    %1 = arith.extui %0 : i1 to i32
    %c0_i32_0 = arith.constant 0 : i32
    %2 = arith.cmpi ne, %1, %c0_i32_0 : i32
    scf.if %2 {
      %cst_10 = arith.constant 0.000000e+00 : f32
      %22 = vector.broadcast %cst_10 : f32 to vector<1x16x1xf32>
      %c0_11 = arith.constant 0 : index
      %c0_12 = arith.constant 0 : index
      %c0_13 = arith.constant 0 : index
      %23 = vector.load %arg3[%c0_11, %c0_12, %c0_13] : memref<1x16x1xf32, #tpu.memory_space<vmem>>, vector<1x16x1xf32>
      tpu.vector_store %arg3[%c0_11, %c0_12, %c0_13], %22 {strides = array<i32>} : memref<1x16x1xf32, #tpu.memory_space<vmem>>, vector<1x16x1xf32>,
    } else {
    }
    %c0 = arith.constant 0 : index
    %c0_1 = arith.constant 0 : index
    %3 = vector.load %arg2[%c0, %c0_1] : memref<16x32xf32, #tpu.memory_space<vmem>>, vector<16x32xf32>
    %cst = arith.constant dense<0xFF800000> : vector<16xf32>
    %4 = vector.multi_reduction <maximumf>, %3, %cst [1] : vector<16x32xf32> to vector<16xf32>
    %5 = vector.shape_cast %4 : vector<16xf32> to vector<16x1xf32>
    %6 = vector.broadcast %5 : vector<16x1xf32> to vector<16x32xf32>
    %7 = arith.subf %3, %6 : vector<16x32xf32>
    %8 = math.exp %7 : vector<16x32xf32>
    %cst_2 = arith.constant dense<0.000000e+00> : vector<16xf32>
    %9 = vector.multi_reduction <add>, %8, %cst_2 [1] : vector<16x32xf32> to vector<16xf32>
    %10 = vector.shape_cast %9 : vector<16xf32> to vector<16x1xf32>
    %11 = math.log %10 : vector<16x1xf32>
    %12 = arith.mulf %8, %7 : vector<16x32xf32>
    %cst_3 = arith.constant dense<0.000000e+00> : vector<16xf32>
    %13 = vector.multi_reduction <add>, %12, %cst_3 [1] : vector<16x32xf32> to vector<16xf32>
    %14 = vector.shape_cast %13 : vector<16xf32> to vector<16x1xf32>
    %15 = tpu.reciprocal %10 : vector<16x1xf32> -> vector<16x1xf32>
    %16 = arith.mulf %14, %15 : vector<16x1xf32>
    %17 = arith.subf %11, %16 : vector<16x1xf32>
    %c0_4 = arith.constant 0 : index
    %c0_5 = arith.constant 0 : index
    %c0_6 = arith.constant 0 : index
    %18 = vector.load %arg3[%c0_4, %c0_5, %c0_6] : memref<1x16x1xf32, #tpu.memory_space<vmem>>, vector<1x16x1xf32>
    %19 = vector.shape_cast %17 : vector<16x1xf32> to vector<1x16x1xf32>
    %20 = arith.addf %18, %19 : vector<1x16x1xf32>
    %c0_7 = arith.constant 0 : index
    %c0_8 = arith.constant 0 : index
    %c0_9 = arith.constant 0 : index
    %21 = vector.load %arg3[%c0_7, %c0_8, %c0_9] : memref<1x16x1xf32, #tpu.memory_space<vmem>>, vector<1x16x1xf32>
    tpu.vector_store %arg3[%c0_7, %c0_8, %c0_9], %20 {strides = array<i32>} : memref<1x16x1xf32, #tpu.memory_space<vmem>>, vector<1x16x1xf32>,
    return
  }
  func.func @transform_0(%arg0: i32, %arg1: i32) -> (i32, i32) {
    %c1_i32 = arith.constant 1 : i32
    %0 = arith.muli %arg0, %c1_i32 : i32
    %1 = arith.addi %0, %arg1 : i32
    %c0_i32 = arith.constant 0 : i32
    %c0_i32_0 = arith.constant 0 : i32
    return %1, %c0_i32 : i32, i32
  }
  func.func @transform_1(%arg0: i32, %arg1: i32) -> (i32, i32, i32) {
    %c0_i32 = arith.constant 0 : i32
    %c0_i32_0 = arith.constant 0 : i32
    %c0_i32_1 = arith.constant 0 : i32
    return %arg0, %c0_i32, %c0_i32_0 : i32, i32, i32
  }
}

</mosaic_0001>

<bundles_post_ra>
// kernel: tpu_custom_call.1
= control target key start
LH: loop header
LB: loop body
LE: loop exit
PB: predicated region body
PF: predicated region fallthrough
CT: control target
= control target key end

     0   :  { %6 = vsyncpa [#allocation3], 0  ;;  %s124_s6 = smov [#allocation2]   ;;  %s169_s0 = inlined_call_operand.hbm [shape: f32[16,32], index: 0, kind: input, shape index: {}]   ;;  %s170_s1 = inlined_call_operand.vmem [shape: f32[1,16,1], index: 1, kind: output, shape index: {}]  }
   0x1   :  { %s16_s7 = sshll.u32 %s124_s6, 4  ;;  %s17_s7 = int_to_ptr.vmem [resolvable:$true] %s16_s7 }
   0x2   :  { %s110_s8 = scalar_lea.vmem %s17_s7, 256  ;;  %p115_p1 = scmp.lt.s32.totalorder %s17_s7, %s17_s7 }
   0x3   :  { %p111_p0 = scmp.ne.s32.totalorder %s17_s7, %s110_s8  ;;  %p116_p2 = scmp.lt.s32.totalorder %s110_s8, %s110_s8 }
   0x5   :  { %p117_p3 = por %p116_p2, %p115_p1 }
   0x7   :  { %p118_p4 = pnand %p117_p3, %p111_p0 }
   0x9   :  { %121 = shalt.err (!%p118_p4)
}
   0xa   :  { %s125_s9 = smov 128   ;;  %s126_s10 = smov 8  }
   0xb   :  { %22 = dma.hbm_to_vmem [thread:$0]  %s169_s0, 256, %s17_s7, [#allocation3], %s125_s9, %s125_s9, %s126_s10  }
   0xc   :  { %122 = dma.done.wait [#allocation3], 256  }
   0xd   :  { %123 = vsyncadd [#allocation3], 4294967040  ;;  %vm32_vm0 = vcmask 7168   ;;  %v127_v0 = vmov 0.0   ;;  %vm37_vm1 = vcmask 261120   ;;  %v35_v1 = vld [vmem:[#allocation2] sm:$0xff] }
   0xe   :  { %33 = vst.msk [vmem:[%s170_s1] sm:$0xff] %vm32_vm0, %v127_v0  ;;  %34 = vst.msk [vmem:[%s170_s1 + $0x8] sm:$0xff] %vm32_vm0, %v127_v0  ;;  %v36_v2 = vld [vmem:[#allocation2 + $0x8] sm:$0xff]  ;;  %v38_v3 = vsel %vm37_vm1, %v35_v1, -inf }
   0xf   :  { %39 = vmax.xlane.f32.xlu0 %v38_v3  ;;  %v41_v4 = vsel %vm37_vm1, %v36_v2, -inf }
  0x13   :  { %42 = vmax.xlane.f32.xlu0 %v41_v4 }
  0x15   :  { %v74_v26 = vld [vmem:[%s170_s1] sm:$0xff]  ;;  %v75_v34 = vld [vmem:[%s170_s1 + $0x8] sm:$0xff] }
  0x98   :  { %v40_v5 = vpop.xlane.xlu0 %39 }
  0x99   :  { %v44_v6 = vsub.f32 %v35_v1, %v40_v5 }
  0x9b   :  { %v46_v7 = vmul.f32 1.442695, %v44_v6 }
  0x9c   :  { %v43_v8 = vpop.xlane.xlu0 %42 }
  0x9d   :  { %90 = vpow2.f32 %v46_v7  ;;  %v45_v9 = vsub.f32 %v36_v2, %v43_v8 }
  0x9f   :  { %v48_v10 = vmul.f32 1.442695, %v45_v9 }
  0xa1   :  { %92 = vpow2.f32 %v48_v10 }
  0xaa   :  { %v91_v11 = vpop.eup %90 }
  0xab   :  { %v50_v12 = vsel %vm37_vm1, %v91_v11, 0.0  ;;  %v60_v13 = vmul.f32 %v91_v11, %v44_v6 }
  0xac   :  { %51 = vadd.xlane.f32.xlu1 %v50_v12 }
  0xad   :  { %v62_v14 = vsel %vm37_vm1, %v60_v13, 0.0 }
  0xae   :  { %v93_v15 = vpop.eup %92  ;;  %63 = vadd.xlane.f32.xlu0 %v62_v14 }
  0xaf   :  { %v53_v16 = vsel %vm37_vm1, %v93_v15, 0.0  ;;  %v61_v17 = vmul.f32 %v93_v15, %v45_v9 }
  0xb0   :  { %54 = vadd.xlane.f32.xlu1 %v53_v16 }
  0xb1   :  { %v65_v18 = vsel %vm37_vm1, %v61_v17, 0.0 }
  0xb4   :  { %66 = vadd.xlane.f32.xlu1 %v65_v18 }
 0x135   :  { %v52_v19 = vpop.xlane.xlu1 %51 }
 0x136   :  { %94 = vlog2.f32 %v52_v19 }
 0x137   :  { %96 = vrcp.f32 %v52_v19  ;;  %v64_v24 = vpop.xlane.xlu0 %63 }
 0x139   :  { %v55_v20 = vpop.xlane.xlu1 %54 }
 0x13a   :  { %98 = vlog2.f32 %v55_v20 }
 0x13b   :  { %100 = vrcp.f32 %v55_v20 }
 0x13d   :  { %v67_v31 = vpop.xlane.xlu1 %66 }
 0x143   :  { %v95_v21 = vpop.eup %94 }
 0x144   :  { %v97_v22 = vpop.eup %96  ;;  %v57_v23 = vmul.f32 0.6931472, %v95_v21 }
 0x145   :  { %v70_v25 = vmul.f32 %v97_v22, %v64_v24 }
 0x147   :  { %v99_v27 = vpop.eup %98  ;;  %v72_v28 = vsub.f32 %v57_v23, %v70_v25 }
 0x148   :  { %v101_v29 = vpop.eup %100  ;;  %v59_v30 = vmul.f32 0.6931472, %v99_v27 }
 0x149   :  { %v76_v32 = vadd.f32 %v74_v26, %v72_v28  ;;  %v71_v33 = vmul.f32 %v101_v29, %v67_v31 }
 0x14b   :  { %79 = vst.msk [vmem:[%s170_s1] sm:$0xff] %vm32_vm0, %v76_v32  ;;  %v73_v35 = vsub.f32 %v59_v30, %v71_v33 }
 0x14d   :  { %v77_v36 = vadd.f32 %v75_v34, %v73_v35 }
 0x14f   :  { %80 = vst.msk [vmem:[%s170_s1 + $0x8] sm:$0xff] %vm32_vm0, %v77_v36 }
 0x150   :  { %85 = vsyncpa [#allocation3], 1 }

</bundles_post_ra>
